<compile_context>
chip_gen: v6e
topology: v6e:2x2x1
jax: 0.10.0
libtpu: 0.0.40
codegen_flags: <defaults>
</compile_context>

<pallas_src>
import functools

import jax
import jax.numpy as jnp
from jax.experimental import pallas as pl
from jax.experimental.pallas import tpu as pltpu

IN_FEATURES = 7 * 7 * 32   # 1568
OUT_FEATURES = 10

_LANE = 128
_SUBLANE = 8
# Largest batch tile streamed per grid step.  Footprint with the f32 x read:
# 2048*1568*4 B * 2 buffers ~= 25.6 MiB + ~2 MiB out + ~0.4 MiB W/b ~= 28 MiB,
# inside the 40 MiB scoped-VMEM limit below and under v7x's 64 MiB physical.
_MAX_BATCH_TILE = 2048
_VMEM_LIMIT_BYTES = 40 << 20


def _round_up(v, m):
    return ((v + m - 1) // m) * m


def fc_kernel(x_ref, w_ref, b_ref, o_ref):
    # x (tb, K) f32 -> bf16 cast on the VPU, W (K, Np) bf16 (VMEM-resident),
    # b (1, Np) f32.  MXU matmul with f32 accumulation; bias add on the VPU.
    x_bf16 = x_ref[...].astype(jnp.bfloat16)
    acc = jnp.dot(x_bf16, w_ref[...], preferred_element_type=jnp.float32)
    o_ref[...] = acc + b_ref[...]


def prepare_params(w_t, b):
    """One-time weight prep, hoisted out of the per-call path.

    w_t: (K, 10) f32 -> (K, 128) bf16 (lane-dense N for unmasked MXU/stores)
    b:   (10,)  f32 -> (1, 128) f32
    """
    K, N = w_t.shape
    Np = _round_up(N, _LANE)
    w_p = jnp.pad(w_t.astype(jnp.bfloat16), ((0, 0), (0, Np - N)))
    b_p = jnp.pad(b.astype(jnp.float32), (0, Np - N)).reshape(1, Np)
    return w_p, b_p


@functools.partial(jax.jit, static_argnames=("block_b",))
def fc_mnist_forward(x, w_p, b_p, *, block_b=None):
    """x: (B, 1568) f32, w_p: (1568, 128) bf16, b_p: (1, 128) f32 -> (B, 10) f32."""
    B, K = x.shape
    Np = w_p.shape[1]

    if block_b is None:
        if B <= _MAX_BATCH_TILE:
            block_b = _round_up(B, _SUBLANE)
        else:
            # Ensure >= 2 (roughly even) grid steps so the "parallel" batch
            # axis actually shards across v7x's two TensorCores.
            block_b = min(_MAX_BATCH_TILE, _round_up(pl.cdiv(B, 2), _SUBLANE))
    tb = block_b

    out = pl.pallas_call(
        fc_kernel,
        out_shape=jax.ShapeDtypeStruct((B, Np), jnp.float32),
        grid_spec=pl.GridSpec(
            grid=(pl.cdiv(B, tb),),
            in_specs=[
                # Streamed x tiles; K kept unpadded (block dim == full array
                # dim satisfies the (8,128) rule); cast to bf16 in-kernel.
                pl.BlockSpec((tb, K), lambda i: (i, 0)),
                # VMEM-resident weight / bias (constant index_map).
                # TODO(synk): pipeline_mode=pl.Buffered(1) would drop W's
                # second buffer (~0.4 MiB); skipped — ample VMEM headroom.
                pl.BlockSpec((K, Np), lambda i: (0, 0)),
                pl.BlockSpec((1, Np), lambda i: (0, 0)),
            ],
            out_specs=pl.BlockSpec((tb, Np), lambda i: (i, 0)),
        ),
        compiler_params=pltpu.CompilerParams(
            dimension_semantics=("parallel",),   # batch rows are independent
            vmem_limit_bytes=_VMEM_LIMIT_BYTES,
        ),
        cost_estimate=pl.CostEstimate(
            flops=2 * B * K * Np,
            transcendentals=0,
            bytes_accessed=B * K * 4 + K * Np * 2 + Np * 4 + B * Np * 4,
        ),
    )(x, w_p, b_p)

    return out[:, :OUT_FEATURES]


def init_params(key):
    # Deterministic init mimicking torch.nn.Linear: U(-1/sqrt(in), 1/sqrt(in)).
    kw, kb = jax.random.split(key)
    bound = 1.0 / jnp.sqrt(jnp.float32(IN_FEATURES))
    # Weight stored already transposed: (K, N).
    w_t = jax.random.uniform(
        kw, (IN_FEATURES, OUT_FEATURES), jnp.float32, minval=-bound, maxval=bound
    )
    b = jax.random.uniform(
        kb, (OUT_FEATURES,), jnp.float32, minval=-bound, maxval=bound
    )
    return w_t, b


def _check(out, x, w_t, b):
    # Matched-precision reference: bf16 inputs, f32 accumulation (same as the
    # kernel's MXU path).  Comparing only against this avoids tolerance-tuned
    # flakiness of a full-f32 reference over the K=1568 reduction.
    ref = (
        x.astype(jnp.bfloat16).astype(jnp.float32)
        @ w_t.astype(jnp.bfloat16).astype(jnp.float32)
        + b[None, :]
    )
    assert jnp.allclose(out, ref, atol=1e-3, rtol=1e-3)


if __name__ == "__main__":
    key = jax.random.PRNGKey(0)
    kx, kp = jax.random.split(key)
    w_t, b = init_params(kp)
    w_p, b_p = prepare_params(w_t, b)   # one-time, outside the per-call path

    # Primary small-shape test (batch=2, features=7*7*32 as the module implies).
    B = 2
    x = jax.random.normal(kx, (B, IN_FEATURES), jnp.float32)
    out = jax.block_until_ready(fc_mnist_forward(x, w_p, b_p))
    assert out.shape == (B, OUT_FEATURES)
    _check(out, x, w_t, b)

    # Secondary test: multi-step pipelined batch path + a partial final tile
    # (100 = 3*32 + 4) to exercise the cdiv-grid / masked-writeback path.
    B2 = 100
    x2 = jax.random.normal(jax.random.PRNGKey(1), (B2, IN_FEATURES), jnp.float32)
    out2 = jax.block_until_ready(fc_mnist_forward(x2, w_p, b_p, block_b=32))
    assert out2.shape == (B2, OUT_FEATURES)
    _check(out2, x2, w_t, b)

    print("KERNEL_OK")
</pallas_src>

<mosaic_0001>
module attributes {stable_mosaic.version = 11 : i64} {
  func.func @fc_kernel(%arg0: i32, %arg1: memref<8x1568xf32, #tpu.memory_space<vmem>>, %arg2: memref<1568x128xbf16, #tpu.memory_space<vmem>>, %arg3: memref<1x128xf32, #tpu.memory_space<vmem>>, %arg4: memref<8x128xf32, #tpu.memory_space<vmem>>) attributes {dimension_semantics = [#tpu.dimension_semantics<parallel>], iteration_bounds = array<i64: 1>, scalar_prefetch = 0 : i64, scratch_operands = 0 : i64, tpu.core_type = #tpu.core_type<tc>, window_params = [{transform_indices = @transform_0, window_bounds = array<i64: 8, 1568>}, {pipeline_mode = #tpu.pipeline_mode<synchronous>, transform_indices = @transform_1, window_bounds = array<i64: 1568, 128>}, {pipeline_mode = #tpu.pipeline_mode<synchronous>, transform_indices = @transform_2, window_bounds = array<i64: 1, 128>}, {transform_indices = @transform_3, window_bounds = array<i64: 8, 128>}]} {
    %c0 = arith.constant 0 : index
    %c0_0 = arith.constant 0 : index
    %0 = vector.load %arg1[%c0, %c0_0] : memref<8x1568xf32, #tpu.memory_space<vmem>>, vector<8x1568xf32>
    %1 = arith.truncf %0 : vector<8x1568xf32> to vector<8x1568xbf16>
    %c0_1 = arith.constant 0 : index
    %c0_2 = arith.constant 0 : index
    %2 = vector.load %arg2[%c0_1, %c0_2] : memref<1568x128xbf16, #tpu.memory_space<vmem>>, vector<1568x128xbf16>
    %cst = arith.constant dense<0.000000e+00> : vector<8x128xf32>
    %3 = tpu.matmul %1, %2, %cst {dimension_numbers = #tpu.dot_dimension_numbers<[1], [0], [0], [1], [0, 0, 1, 1], [], []>} : vector<8x1568xbf16>, vector<1568x128xbf16>, vector<8x128xf32> -> vector<8x128xf32>
    %c0_3 = arith.constant 0 : index
    %c0_4 = arith.constant 0 : index
    %4 = vector.load %arg3[%c0_3, %c0_4] : memref<1x128xf32, #tpu.memory_space<vmem>>, vector<1x128xf32>
    %5 = vector.broadcast %4 : vector<1x128xf32> to vector<8x128xf32>
    %6 = arith.addf %3, %5 : vector<8x128xf32>
    %c0_5 = arith.constant 0 : index
    %c0_6 = arith.constant 0 : index
    %7 = vector.load %arg4[%c0_5, %c0_6] : memref<8x128xf32, #tpu.memory_space<vmem>>, vector<8x128xf32>
    tpu.vector_store %arg4[%c0_5, %c0_6], %6 {strides = array<i32>} : memref<8x128xf32, #tpu.memory_space<vmem>>, vector<8x128xf32>,
    return
  }
  func.func @transform_0(%arg0: i32) -> (i32, i32) {
    %c0_i32 = arith.constant 0 : i32
    %c0_i32_0 = arith.constant 0 : i32
    return %arg0, %c0_i32 : i32, i32
  }
  func.func @transform_1(%arg0: i32) -> (i32, i32) {
    %c0_i32 = arith.constant 0 : i32
    %c0_i32_0 = arith.constant 0 : i32
    %c0_i32_1 = arith.constant 0 : i32
    return %c0_i32, %c0_i32_0 : i32, i32
  }
  func.func @transform_2(%arg0: i32) -> (i32, i32) {
    %c0_i32 = arith.constant 0 : i32
    %c0_i32_0 = arith.constant 0 : i32
    %c0_i32_1 = arith.constant 0 : i32
    return %c0_i32, %c0_i32_0 : i32, i32
  }
  func.func @transform_3(%arg0: i32) -> (i32, i32) {
    %c0_i32 = arith.constant 0 : i32
    %c0_i32_0 = arith.constant 0 : i32
    return %arg0, %c0_i32 : i32, i32
  }
}

</mosaic_0001>

<bundles_post_ra>
// kernel: fc_mnist_forward.1
= control target key start
LH: loop header
LB: loop body
LE: loop exit
PB: predicated region body
PF: predicated region fallthrough
CT: control target
= control target key end

     0   :  { %8 = vsyncpa [#allocation3], 0  ;;  %s1820_s0 = inlined_call_operand.hbm [shape: f32[2,1568], index: 0, kind: input, shape index: {}]   ;;  %s1821_s1 = inlined_call_operand.hbm [shape: bf16[1568,128], index: 1, kind: input, shape index: {}]   ;;  %s1822_s2 = inlined_call_operand.vmem [shape: f32[1,128], index: 2, kind: input, shape index: {}]   ;;  %s1823_s3 = inlined_call_operand.hbm [shape: f32[2,128], index: 3, kind: output, shape index: {}]  }
   0x1   :  { %9 = vsyncpa [#allocation6], 0 }
   0x2   :  { %10 = vsyncpa [#allocation4], 0 }
   0x3   :  { %15 = vsyncadd [#allocation3], 1248  ;;  %s1760_s12 = smov [#allocation2]  }
   0x4   :  { %s16_s13 = sshll.u32 %s1760_s12, 4  ;;  %s17_s13 = int_to_ptr.vmem [resolvable:$true] %s16_s13 }
   0x5   :  { %s1702_s14 = scalar_lea.vmem %s17_s13, 416  ;;  %s1706_s15 = scalar_lea.vmem %s17_s13, 1664 }
   0x6   :  { %p1703_p0 = scmp.ne.s32.totalorder %s17_s13, %s1702_s14  ;;  %p1707_p1 = scmp.lt.s32.totalorder %s17_s13, %s17_s13 }
   0x7   :  { %p1708_p2 = scmp.lt.s32.totalorder %s1706_s15, %s1702_s14 }
   0x9   :  { %p1709_p3 = por %p1708_p2, %p1707_p1 }
   0xb   :  { %p1710_p4 = pnand %p1709_p3, %p1703_p0 }
   0xd   :  { %1713 = shalt.err (!%p1710_p4)
}
   0xe   :  { %s1761_s16 = smov 416   ;;  %s1762_s17 = smov 26  }
   0xf   :  { %22 = dma.hbm_to_vmem [thread:$0]  %s1820_s0, 416, %s17_s13, [#allocation3], %s1761_s16, %s1761_s16, %s1762_s17  }
  0x10   :  { %s1763_s20 = smov [#allocation5]  }
  0x11   :  { %s28_s21 = sshll.u32 %s1763_s20, 4  ;;  %s29_s21 = int_to_ptr.vmem [resolvable:$true] %s28_s21 }
  0x12   :  { %s1722_s22 = scalar_lea.vmem %s29_s21, 12544  ;;  %p1727_p6 = scmp.lt.s32.totalorder %s29_s21, %s29_s21 }
  0x13   :  { %p1723_p5 = scmp.ne.s32.totalorder %s29_s21, %s1722_s22  ;;  %p1728_p7 = scmp.lt.s32.totalorder %s1722_s22, %s1722_s22 }
  0x15   :  { %p1729_p8 = por %p1728_p7, %p1727_p6 }
  0x17   :  { %p1730_p9 = pnand %p1729_p8, %p1723_p5 }
  0x19   :  { %1733 = shalt.err (!%p1730_p9)
}
  0x1a   :  { %s1764_s23 = smov 64   ;;  %s1765_s24 = smov 4  }
  0x1b   :  { %34 = dma.hbm_to_vmem [thread:$0]  %s1821_s1, 12544, %s29_s21, [#allocation6], %s1764_s23, %s1764_s23, %s1765_s24  }
  0x1c   :  { %1754 = dma.done.wait [#allocation3], 1664  }
  0x1d   :  { %1755 = vsyncadd [#allocation3], 4294965632 }
  0x1e   :  { %1756 = dma.done.wait [#allocation6], 12544  }
  0x1f   :  { %1757 = vsyncadd [#allocation6], 4294954752  ;;  %v1576_v0 = vld [vmem:[#allocation5 + $0x78] sm:$0xff]   ;;  %v1580_v4 = vld [vmem:[#allocation5 + $0x70] sm:$0xff]   ;;  %v1766_v24 = vmov 1983009808   ;;  %v83_v26 = vlaneseq }
  0x20   :  { %v1577_v1 = vld [vmem:[#allocation5 + $0xf8] sm:$0xff]   ;;  %1421 = vmatprep.subr.bf16.mxu0 %v1576_v0  ;;  %v1581_v5 = vld [vmem:[#allocation5 + $0xf0] sm:$0xff]   ;;  %v1584_v8 = vld [vmem:[#allocation5 + $0x68] sm:$0xff]   ;;  %v81_v25 = vunpack.c.l.s4 %v1766_v24  ;;  %vm1768_vm0 = vmmov 0   ;;  %vm1018_vm1 = vcmask 261120  }
  0x21   :  { %v1578_v2 = vld [vmem:[#allocation5 + $0x38] sm:$0xff]   ;;  %1443 = vmatprep.subr.bf16.mxu1 %v1577_v1  ;;  %v1582_v6 = vld [vmem:[#allocation5 + $0x30] sm:$0xff]   ;;  %v1585_v9 = vld [vmem:[#allocation5 + $0xe8] sm:$0xff]   ;;  %v84_v32 = vshrl.u32 %v83_v26, 7 }
  0x22   :  { %v1579_v3 = vld [vmem:[#allocation5 + $0xb8] sm:$0xff]   ;;  %1422 = vmatpush3.bf16.msra.mxu0 %v1578_v2  ;;  %v1583_v7 = vld [vmem:[#allocation5 + $0xb0] sm:$0xff]   ;;  %v1586_v10 = vld [vmem:[#allocation5 + $0x28] sm:$0xff]   ;;  %v82_v31 = vunpack.c.0.s8 %v81_v25 }
  0x23   :  { %1444 = vmatpush3.bf16.msra.mxu1 %v1579_v3  ;;  %1423 = vmatprep.subr.bf16.mxu0 %v1580_v4  ;;  %v1587_v11 = vld [vmem:[#allocation5 + $0xa8] sm:$0xff]   ;;  %v1588_v12 = vld [vmem:[#allocation5 + $0x60] sm:$0xff]   ;;  %v1592_v16 = vld [vmem:[#allocation5 + $0x58] sm:$0xff]  }
  0x24   :  { %1445 = vmatprep.subr.bf16.mxu1 %v1581_v5  ;;  %v1589_v13 = vld [vmem:[#allocation5 + $0xe0] sm:$0xff]   ;;  %v1593_v17 = vld [vmem:[#allocation5 + $0xd8] sm:$0xff]   ;;  %v1596_v20 = vld [vmem:[#allocation5 + $0x50] sm:$0xff]   ;;  %v1798_v37 = vsub.s32 %v82_v31, %v84_v32 }
  0x25   :  { %v1590_v14 = vld [vmem:[#allocation5 + $0x20] sm:$0xff]   ;;  %v1594_v18 = vld [vmem:[#allocation5 + $0x18] sm:$0xff]   ;;  %v1597_v21 = vld [vmem:[#allocation5 + $0xd0] sm:$0xff]  }
  0x26   :  { %1424 = vmatpush3.bf16.msra.mxu0 %v1582_v6  ;;  %v1591_v15 = vld [vmem:[#allocation5 + $0xa0] sm:$0xff]   ;;  %v1595_v19 = vld [vmem:[#allocation5 + $0x98] sm:$0xff]   ;;  %v1598_v22 = vld [vmem:[#allocation5 + $0x10] sm:$0xff]  }
  0x27   :  { %1446 = vmatpush3.bf16.msra.mxu1 %v1583_v7  ;;  %1425 = vmatprep.subr.bf16.mxu0 %v1584_v8  ;;  %v1599_v23 = vld [vmem:[#allocation5 + $0x90] sm:$0xff]   ;;  %v1600_v27 = vld [vmem:[#allocation5 + $0x48] sm:$0xff]   ;;  %v1604_v33 = vld [vmem:[#allocation5 + $0x40] sm:$0xff]  }
  0x28   :  { %1447 = vmatprep.subr.bf16.mxu1 %v1585_v9  ;;  %v1601_v28 = vld [vmem:[#allocation5 + $0xc8] sm:$0xff]   ;;  %v1605_v34 = vld [vmem:[#allocation5 + $0xc0] sm:$0xff]   ;;  %v1608_v38 = vld [vmem:[#allocation2] ss:$26 sps:$4 sm:$0xff]  }
  0x29   :  { %v1602_v29 = vld [vmem:[#allocation5 + $0x8] sm:$0xff]   ;;  %v1606_v35 = vld [vmem:[#allocation5] sm:$0xff]   ;;  %v1612_v40 = vld [vmem:[#allocation2 + $0x4] ss:$26 sps:$4 sm:$0xff]   ;;  %v86_v42 = vrot.slane %v1608_v38, %v1798_v37 }
  0x2a   :  { %1426 = vmatpush3.bf16.msra.mxu0 %v1586_v10  ;;  %v1603_v30 = vld [vmem:[#allocation5 + $0x88] sm:$0xff]   ;;  %v1607_v36 = vld [vmem:[#allocation5 + $0x80] sm:$0xff]   ;;  %v1614_v44 = vld [vmem:[#allocation5 + $0x178] sm:$0xff]   ;;  %v93_v45 = vrot.slane %v1612_v40, %v1798_v37 }
  0x2b   :  { %1448 = vmatpush3.bf16.msra.mxu1 %v1587_v11  ;;  %1427 = vmatprep.subr.bf16.mxu0 %v1588_v12  ;;  %v1610_v39 = vld [vmem:[#allocation2 + $0x34] ss:$26 sps:$4 sm:$0xff]   ;;  %v1615_v47 = vld [vmem:[#allocation5 + $0x1f8] sm:$0xff]   ;;  %v1618_v56 = vld [vmem:[#allocation5 + $0x170] sm:$0xff]  }
  0x2c   :  { %1449 = vmatprep.subr.bf16.mxu1 %v1589_v13  ;;  %v1613_v41 = vld [vmem:[#allocation2 + $0x38] ss:$26 sps:$4 sm:$0xff]   ;;  %v100_v43 = vrot.slane %v1610_v39, %v1798_v37  ;;  %v1616_v50 = vld [vmem:[#allocation5 + $0x138] sm:$0xff]   ;;  %v1626_v2 = vld [vmem:[#allocation5 + $0x160] sm:$0xff]  }
  0x2d   :  { %v107_v46 = vrot.slane %v1613_v41, %v1798_v37  ;;  %v1617_v53 = vld [vmem:[#allocation5 + $0x1b8] sm:$0xff]   ;;  %v1619_v59 = vld [vmem:[#allocation5 + $0x1f0] sm:$0xff]   ;;  %v1622_v62 = vld [vmem:[#allocation5 + $0x168] sm:$0xff]  }
  0x2e   :  { %1428 = vmatpush3.bf16.msra.mxu0 %v1590_v14  ;;  %v109_v48 = vcombine.high %v86_v42, %v100_v43  ;;  %v108_v49 = vcombine.low %v86_v42, %v100_v43  ;;  %v1620_v60 = vld [vmem:[#allocation5 + $0x130] sm:$0xff]   ;;  %v1623_v63 = vld [vmem:[#allocation5 + $0x1e8] sm:$0xff]   ;;  %v1627_v3 = vld [vmem:[#allocation5 + $0x1e0] sm:$0xff]  }
  0x2f   :  { %1450 = vmatpush3.bf16.msra.mxu1 %v1591_v15  ;;  %1429 = vmatprep.subr.bf16.mxu0 %v1592_v16  ;;  %v111_v51 = vcombine.high %v93_v45, %v107_v46  ;;  %v110_v52 = vcombine.low %v93_v45, %v107_v46  ;;  %v1621_v61 = vld [vmem:[#allocation5 + $0x1b0] sm:$0xff]   ;;  %v1624_v0 = vld [vmem:[#allocation5 + $0x128] sm:$0xff]   ;;  %v1628_v4 = vld [vmem:[#allocation5 + $0x120] sm:$0xff]  }
  0x30   :  { %1451 = vmatprep.subr.bf16.mxu1 %v1593_v17  ;;  %v215_v54 = vpack.c.bf16 %v109_v48, %v109_v48  ;;  %v214_v55 = vpack.c.bf16 %v108_v49, %v108_v49  ;;  %v1625_v1 = vld [vmem:[#allocation5 + $0x1a8] sm:$0xff]   ;;  %v1629_v5 = vld [vmem:[#allocation5 + $0x1a0] sm:$0xff]   ;;  %v1630_v6 = vld [vmem:[#allocation5 + $0x158] sm:$0xff]  }
  0x31   :  { %v217_v57 = vpack.c.bf16 %v111_v51, %v111_v51  ;;  %v216_v58 = vpack.c.bf16 %v110_v52, %v110_v52  ;;  %v1631_v7 = vld [vmem:[#allocation5 + $0x1d8] sm:$0xff]   ;;  %v1634_v10 = vld [vmem:[#allocation5 + $0x150] sm:$0xff]   ;;  %v1638_v14 = vld [vmem:[#allocation5 + $0x148] sm:$0xff]  }
  0x32   :  { %1430 = vmatpush3.bf16.msra.mxu0 %v1594_v18  ;;  %1054 = vmatprep.mubr.bf16.mxu0 %v215_v54  ;;  %v1632_v8 = vld [vmem:[#allocation5 + $0x118] sm:$0xff]   ;;  %v1635_v11 = vld [vmem:[#allocation5 + $0x1d0] sm:$0xff]   ;;  %v1639_v15 = vld [vmem:[#allocation5 + $0x1c8] sm:$0xff]  }
  0x33   :  { %1452 = vmatpush3.bf16.msra.mxu1 %v1595_v19  ;;  %1431 = vmatprep.subr.bf16.mxu0 %v1596_v20  ;;  %v1633_v9 = vld [vmem:[#allocation5 + $0x198] sm:$0xff]   ;;  %v1636_v12 = vld [vmem:[#allocation5 + $0x110] sm:$0xff]   ;;  %v1640_v16 = vld [vmem:[#allocation5 + $0x108] sm:$0xff]  }
  0x34   :  { %1453 = vmatprep.subr.bf16.mxu1 %v1597_v21  ;;  %1094 = vmatprep.mubr.bf16.mxu1 %v217_v57  ;;  %v1637_v13 = vld [vmem:[#allocation5 + $0x190] sm:$0xff]   ;;  %v1641_v17 = vld [vmem:[#allocation5 + $0x188] sm:$0xff]   ;;  %v1642_v18 = vld [vmem:[#allocation5 + $0x140] sm:$0xff]  }
  0x35   :  { %v1643_v19 = vld [vmem:[#allocation5 + $0x1c0] sm:$0xff]   ;;  %v1651_v25 = vld [vmem:[#allocation2 + $0x40] ss:$26 sps:$4 sm:$0xff]   ;;  %v1661_v48 = vld [vmem:[#allocation5 + $0x2e8] sm:$0xff]  }
  0x36   :  { %1432 = vmatpush3.bf16.msra.mxu0 %v1598_v22  ;;  %v1644_v20 = vld [vmem:[#allocation5 + $0x100] sm:$0xff]   ;;  %v1653_v31 = vld [vmem:[#allocation5 + $0x2f8] sm:$0xff]   ;;  %v1656_v41 = vld [vmem:[#allocation5 + $0x270] sm:$0xff]  }
  0x37   :  { %1454 = vmatpush3.bf16.msra.mxu1 %v1599_v23  ;;  %1433 = vmatprep.subr.bf16.mxu0 %v1600_v27  ;;  %v1645_v21 = vld [vmem:[#allocation5 + $0x180] sm:$0xff]   ;;  %v1648_v23 = vld [vmem:[#allocation2 + $0x3c] ss:$26 sps:$4 sm:$0xff]   ;;  %v1655_v38 = vld [vmem:[#allocation5 + $0x2b8] sm:$0xff]  }
  0x38   :  { %1455 = vmatprep.subr.bf16.mxu1 %v1601_v28  ;;  %v1646_v22 = vld [vmem:[#allocation2 + $0x8] ss:$26 sps:$4 sm:$0xff]   ;;  %v136_v27 = vrot.slane %v1648_v23, %v1798_v37  ;;  %v1658_v45 = vld [vmem:[#allocation5 + $0x230] sm:$0xff]   ;;  %v1662_v49 = vld [vmem:[#allocation5 + $0x228] sm:$0xff]  }
  0x39   :  { %v1650_v24 = vld [vmem:[#allocation2 + $0xc] ss:$26 sps:$4 sm:$0xff]   ;;  %v122_v26 = vrot.slane %v1646_v22, %v1798_v37  ;;  %v1659_v46 = vld [vmem:[#allocation5 + $0x2b0] sm:$0xff]  }
  0x3a   :  { %1434 = vmatpush3.bf16.msra.mxu0 %v1602_v29  ;;  %v129_v28 = vrot.slane %v1650_v24, %v1798_v37  ;;  %v1652_v29 = vld [vmem:[#allocation5 + $0x278] sm:$0xff]   ;;  %v1664_v51 = vld [vmem:[#allocation5 + $0x260] sm:$0xff]  }
  0x3b   :  { %1456 = vmatpush3.bf16.msra.mxu1 %v1603_v30  ;;  %1435 = vmatprep.subr.bf16.mxu0 %v1604_v33  ;;  %v143_v30 = vrot.slane %v1651_v25, %v1798_v37  ;;  %v145_v32 = vcombine.high %v122_v26, %v136_v27  ;;  %v144_v33 = vcombine.low %v122_v26, %v136_v27  ;;  %v1665_v52 = vld [vmem:[#allocation5 + $0x2e0] sm:$0xff]   ;;  %v1670_v57 = vld [vmem:[#allocation5 + $0x218] sm:$0xff]   ;;  %v1690_v26 = vld [vmem:[#allocation5 + $0x308] sm:$0xff]  }
  0x3c   :  { %1457 = vmatprep.subr.bf16.mxu1 %v1605_v34  ;;  %v1654_v34 = vld [vmem:[#allocation5 + $0x238] sm:$0xff]   ;;  %v1667_v54 = vld [vmem:[#allocation5 + $0x2a0] sm:$0xff]  }
  0x3d   :  { %v219_v39 = vpack.c.bf16 %v145_v32, %v145_v32  ;;  %v218_v40 = vpack.c.bf16 %v144_v33, %v144_v33 }
  0x3e   :  { %1436 = vmatpush3.bf16.msra.mxu0 %v1606_v35  ;;  %v147_v35 = vcombine.high %v129_v28, %v143_v30 }
  0x3f   :  { %1458 = vmatpush3.bf16.msra.mxu1 %v1607_v36  ;;  %1465 = vmatprep.subr.bf16.mxu0 %v1614_v44  ;;  %v146_v36 = vcombine.low %v129_v28, %v143_v30  ;;  %v1657_v44 = vld [vmem:[#allocation5 + $0x2f0] sm:$0xff]   ;;  %v1691_v30 = vld [vmem:[#allocation5 + $0x300] sm:$0xff]  }
  0x40   :  { %1487 = vmatprep.subr.bf16.mxu1 %v1615_v47  ;;  %v221_v42 = vpack.c.bf16 %v147_v35, %v147_v35  ;;  %v1660_v47 = vld [vmem:[#allocation5 + $0x268] sm:$0xff]  }
  0x41   :  { %1055 = vmatmul.mubr.bf16.vlgmr.msra.gmra.mxu0 %v214_v55  ;;  %v220_v43 = vpack.c.bf16 %v146_v36, %v146_v36  ;;  %v1668_v55 = vld [vmem:[#allocation5 + $0x258] sm:$0xff]  }
  0x42   :  { %1095 = vmatmul.mubr.bf16.vlgmr.msra.gmra.mxu1 %v216_v58  ;;  %1466 = vmatpush3.bf16.msra.mxu0 %v1616_v50  ;;  %v1663_v50 = vld [vmem:[#allocation5 + $0x2a8] sm:$0xff]   ;;  %v1671_v58 = vld [vmem:[#allocation5 + $0x298] sm:$0xff]  }
  0x43   :  { %1488 = vmatpush3.bf16.msra.mxu1 %v1617_v53  ;;  %1467 = vmatprep.subr.bf16.mxu0 %v1618_v56  ;;  %v1666_v53 = vld [vmem:[#allocation5 + $0x220] sm:$0xff]   ;;  %v1669_v56 = vld [vmem:[#allocation5 + $0x2d8] sm:$0xff]  }
  0x44   :  { %1489 = vmatprep.subr.bf16.mxu1 %v1619_v59  ;;  %1134 = vmatprep.mubr.bf16.mxu0 %v219_v39  ;;  %v1672_v59 = vld [vmem:[#allocation5 + $0x250] sm:$0xff]  }
  0x45   :  { %1174 = vmatprep.mubr.bf16.mxu1 %v221_v42 }
  0x46   :  { %1468 = vmatpush3.bf16.msra.mxu0 %v1620_v60  ;;  %v1673_v60 = vld [vmem:[#allocation5 + $0x2d0] sm:$0xff]  }
  0x47   :  { %1490 = vmatpush3.bf16.msra.mxu1 %v1621_v61  ;;  %1469 = vmatprep.subr.bf16.mxu0 %v1622_v62  ;;  %v1674_v61 = vld [vmem:[#allocation5 + $0x210] sm:$0xff]  }
  0x48   :  { %1491 = vmatprep.subr.bf16.mxu1 %v1623_v63  ;;  %v1675_v62 = vld [vmem:[#allocation5 + $0x290] sm:$0xff]   ;;  %v1676_v63 = vld [vmem:[#allocation5 + $0x248] sm:$0xff]  }
  0x4a   :  { %1470 = vmatpush3.bf16.msra.mxu0 %v1624_v0  ;;  %v1677_v0 = vld [vmem:[#allocation5 + $0x2c8] sm:$0xff]  }
  0x4b   :  { %1492 = vmatpush3.bf16.msra.mxu1 %v1625_v1  ;;  %1471 = vmatprep.subr.bf16.mxu0 %v1626_v2  ;;  %v1678_v1 = vld [vmem:[#allocation5 + $0x208] sm:$0xff]  }
  0x4c   :  { %1493 = vmatprep.subr.bf16.mxu1 %v1627_v3  ;;  %v1679_v2 = vld [vmem:[#allocation5 + $0x288] sm:$0xff]   ;;  %v1680_v3 = vld [vmem:[#allocation5 + $0x240] sm:$0xff]  }
  0x4e   :  { %1472 = vmatpush3.bf16.msra.mxu0 %v1628_v4  ;;  %v1681_v4 = vld [vmem:[#allocation5 + $0x2c0] sm:$0xff]  }
  0x4f   :  { %1494 = vmatpush3.bf16.msra.mxu1 %v1629_v5  ;;  %1473 = vmatprep.subr.bf16.mxu0 %v1630_v6  ;;  %v1682_v5 = vld [vmem:[#allocation5 + $0x200] sm:$0xff]  }
  0x50   :  { %1495 = vmatprep.subr.bf16.mxu1 %v1631_v7  ;;  %v1683_v6 = vld [vmem:[#allocation5 + $0x280] sm:$0xff]  }
  0x51   :  { %v1684_v7 = vld [vmem:[#allocation2 + $0x10] ss:$26 sps:$4 sm:$0xff]  }
  0x52   :  { %1474 = vmatpush3.bf16.msra.mxu0 %v1632_v8  ;;  %v1686_v8 = vld [vmem:[#allocation2 + $0x44] ss:$26 sps:$4 sm:$0xff]  }
  0x53   :  { %1496 = vmatpush3.bf16.msra.mxu1 %v1633_v9  ;;  %1475 = vmatprep.subr.bf16.mxu0 %v1634_v10  ;;  %v1688_v9 = vld [vmem:[#allocation2 + $0x14] ss:$26 sps:$4 sm:$0xff]   ;;  %v1689_v10 = vld [vmem:[#allocation2 + $0x48] ss:$26 sps:$4 sm:$0xff]  }
  0x54   :  { %1497 = vmatprep.subr.bf16.mxu1 %v1635_v11  ;;  %v158_v11 = vrot.slane %v1684_v7, %v1798_v37 }
  0x56   :  { %1476 = vmatpush3.bf16.msra.mxu0 %v1636_v12  ;;  %v172_v12 = vrot.slane %v1686_v8, %v1798_v37 }
  0x57   :  { %1498 = vmatpush3.bf16.msra.mxu1 %v1637_v13  ;;  %1477 = vmatprep.subr.bf16.mxu0 %v1638_v14  ;;  %v165_v13 = vrot.slane %v1688_v9, %v1798_v37  ;;  %v179_v14 = vrot.slane %v1689_v10, %v1798_v37 }
  0x58   :  { %1499 = vmatprep.subr.bf16.mxu1 %v1639_v15  ;;  %v181_v15 = vcombine.high %v158_v11, %v172_v12 }
  0x5a   :  { %1478 = vmatpush3.bf16.msra.mxu0 %v1640_v16  ;;  %v183_v16 = vcombine.high %v165_v13, %v179_v14  ;;  %v223_v22 = vpack.c.bf16 %v181_v15, %v181_v15 }
  0x5b   :  { %1500 = vmatpush3.bf16.msra.mxu1 %v1641_v17  ;;  %1479 = vmatprep.subr.bf16.mxu0 %v1642_v18  ;;  %v180_v17 = vcombine.low %v158_v11, %v172_v12  ;;  %v182_v18 = vcombine.low %v165_v13, %v179_v14 }
  0x5c   :  { %1501 = vmatprep.subr.bf16.mxu1 %v1643_v19  ;;  %v1692_v19 = vld [vmem:[#allocation2 + $0x18] ss:$26 sps:$4 sm:$0x33]   ;;  %v225_v23 = vpack.c.bf16 %v183_v16, %v183_v16 }
  0x5d   :  { %v222_v24 = vpack.c.bf16 %v180_v17, %v180_v17  ;;  %v224_v25 = vpack.c.bf16 %v182_v18, %v182_v18  ;;  %v192_v27 = vrot.slane %v1692_v19, %v1798_v37 }
  0x5e   :  { %1480 = vmatpush3.bf16.msra.mxu0 %v1644_v20  ;;  %v1767_v20 = vmov 0.0  }
  0x5f   :  { %1502 = vmatpush3.bf16.msra.mxu1 %v1645_v21  ;;  %1509 = vmatprep.subr.bf16.mxu0 %v1652_v29  ;;  %v1693_v21 = vld [vmem:[#allocation2 + $0x4c] ss:$26 sps:$4 sm:$0x33]  }
  0x60   :  { %1531 = vmatprep.subr.bf16.mxu1 %v1653_v31  ;;  %v199_v28 = vrot.slane %v1693_v21, %v1798_v37  ;;  %v1321_v37 = vld [vmem:[%s1822_s2] ss:$0 sm:$0xff] }
  0x61   :  { %1135 = vmatmul.mubr.bf16.vlgmr.msra.gmra.mxu0 %v218_v40 }
  0x62   :  { %1175 = vmatmul.mubr.bf16.vlgmr.msra.gmra.mxu1 %v220_v43  ;;  %1510 = vmatpush3.bf16.msra.mxu0 %v1654_v34  ;;  %v200_v29 = vcombine.low %v192_v27, %v199_v28 }
  0x63   :  { %1532 = vmatpush3.bf16.msra.mxu1 %v1655_v38  ;;  %1511 = vmatprep.subr.bf16.mxu0 %v1656_v41 }
  0x64   :  { %1533 = vmatprep.subr.bf16.mxu1 %v1657_v44  ;;  %1214 = vmatprep.mubr.bf16.mxu0 %v223_v22  ;;  %v226_v31 = vpack.c.bf16 %v200_v29, %v200_v29 }
  0x65   :  { %1254 = vmatprep.mubr.bf16.mxu1 %v225_v23 }
  0x66   :  { %1512 = vmatpush3.bf16.msra.mxu0 %v1658_v45 }
  0x67   :  { %1534 = vmatpush3.bf16.msra.mxu1 %v1659_v46  ;;  %1513 = vmatprep.subr.bf16.mxu0 %v1660_v47 }
  0x68   :  { %1535 = vmatprep.subr.bf16.mxu1 %v1661_v48 }
  0x6a   :  { %1514 = vmatpush3.bf16.msra.mxu0 %v1662_v49 }
  0x6b   :  { %1536 = vmatpush3.bf16.msra.mxu1 %v1663_v50  ;;  %1515 = vmatprep.subr.bf16.mxu0 %v1664_v51 }
  0x6c   :  { %1537 = vmatprep.subr.bf16.mxu1 %v1665_v52 }
  0x6e   :  { %1516 = vmatpush3.bf16.msra.mxu0 %v1666_v53 }
  0x6f   :  { %1538 = vmatpush3.bf16.msra.mxu1 %v1667_v54  ;;  %1517 = vmatprep.subr.bf16.mxu0 %v1668_v55 }
  0x70   :  { %1539 = vmatprep.subr.bf16.mxu1 %v1669_v56 }
  0x72   :  { %1518 = vmatpush3.bf16.msra.mxu0 %v1670_v57 }
  0x73   :  { %1540 = vmatpush3.bf16.msra.mxu1 %v1671_v58  ;;  %1519 = vmatprep.subr.bf16.mxu0 %v1672_v59 }
  0x74   :  { %1541 = vmatprep.subr.bf16.mxu1 %v1673_v60 }
  0x76   :  { %1520 = vmatpush3.bf16.msra.mxu0 %v1674_v61 }
  0x77   :  { %1542 = vmatpush3.bf16.msra.mxu1 %v1675_v62  ;;  %1521 = vmatprep.subr.bf16.mxu0 %v1676_v63 }
  0x78   :  { %1543 = vmatprep.subr.bf16.mxu1 %v1677_v0 }
  0x7a   :  { %1522 = vmatpush3.bf16.msra.mxu0 %v1678_v1 }
  0x7b   :  { %1544 = vmatpush3.bf16.msra.mxu1 %v1679_v2  ;;  %1523 = vmatprep.subr.bf16.mxu0 %v1680_v3 }
  0x7c   :  { %1545 = vmatprep.subr.bf16.mxu1 %v1681_v4 }
  0x7e   :  { %1524 = vmatpush3.bf16.msra.mxu0 %v1682_v5 }
  0x7f   :  { %1546 = vmatpush3.bf16.msra.mxu1 %v1683_v6  ;;  %1556 = vmatprep.subr.bf16.mxu0 %v1767_v20 }
  0x81   :  { %1215 = vmatmul.mubr.bf16.vlgmr.msra.gmra.mxu0 %v222_v24 }
  0x82   :  { %1255 = vmatmul.mubr.bf16.vlgmr.msra.gmra.mxu1 %v224_v25  ;;  %1557 = vmatpush3.bf16.msra.mxu0 %v1690_v26 }
  0x83   :  { %1560 = vmatprep.mubr.msk.bf16.mxu0 %vm1768_vm0, %v1767_v20  ;;  %1558 = vmatprep.subr.bf16.mxu0 %v1767_v20 }
  0x86   :  { %1559 = vmatpush3.bf16.msra.mxu0 %v1691_v30 }
  0x89   :  { %1561 = vmatmul.mubr.msk.bf16.vlgmr.msra.gmra.mxu0 %vm1018_vm1, %v226_v31 }
 0x101   :  { %v1437_v32 = vpop.f32.mrf.mxu0 }
 0x102   :  { %v1459_v33 = vpop.f32.mrf.mxu1 }
 0x103   :  { %v1438_v34 = vpop.f32.mrf.mxu0 }
 0x104   :  { %v1439_v35 = vadd.f32 %v1438_v34, %v1437_v32  ;;  %v1460_v36 = vpop.f32.mrf.mxu1 }
 0x105   :  { %v1461_v38 = vadd.f32 %v1460_v36, %v1459_v33  ;;  %v1440_v39 = vpop.f32.mrf.mxu0 }
 0x106   :  { %v1057_v40 = vadd.f32 %v1439_v35, %v1321_v37  ;;  %v1462_v41 = vpop.f32.mrf.mxu1 }
 0x107   :  { %v1441_v42 = vpop.f32.mrf.mxu0 }
 0x108   :  { %v1097_v43 = vadd.f32 %v1461_v38, %v1057_v40  ;;  %v1463_v44 = vpop.f32.mrf.mxu1 }
 0x121   :  { %v1481_v45 = vpop.f32.mrf.mxu0 }
 0x122   :  { %v1503_v46 = vpop.f32.mrf.mxu1 }
 0x123   :  { %v1482_v47 = vpop.f32.mrf.mxu0 }
 0x124   :  { %v1504_v48 = vpop.f32.mrf.mxu1  ;;  %v1483_v53 = vadd.f32 %v1482_v47, %v1481_v45 }
 0x125   :  { %v1484_v49 = vpop.f32.mrf.mxu0  ;;  %v1505_v55 = vadd.f32 %v1504_v48, %v1503_v46 }
 0x126   :  { %v1506_v50 = vpop.f32.mrf.mxu1  ;;  %v1137_v54 = vadd.f32 %v1483_v53, %v1097_v43 }
 0x127   :  { %v1485_v51 = vpop.f32.mrf.mxu0 }
 0x128   :  { %v1507_v52 = vpop.f32.mrf.mxu1  ;;  %v1177_v60 = vadd.f32 %v1505_v55, %v1137_v54 }
 0x141   :  { %v1525_v56 = vpop.f32.mrf.mxu0 }
 0x142   :  { %v1547_v57 = vpop.f32.mrf.mxu1 }
 0x143   :  { %v1526_v58 = vpop.f32.mrf.mxu0 }
 0x144   :  { %v1548_v59 = vpop.f32.mrf.mxu1  ;;  %v1527_v61 = vadd.f32 %v1526_v58, %v1525_v56 }
 0x145   :  { %v1549_v62 = vadd.f32 %v1548_v59, %v1547_v57  ;;  %v1528_v63 = vpop.f32.mrf.mxu0 }
 0x146   :  { %v1550_v0 = vpop.f32.mrf.mxu1  ;;  %v1217_v1 = vadd.f32 %v1527_v61, %v1177_v60 }
 0x147   :  { %v1529_v2 = vpop.f32.mrf.mxu0 }
 0x148   :  { %v1551_v3 = vpop.f32.mrf.mxu1  ;;  %v1257_v4 = vadd.f32 %v1549_v62, %v1217_v1 }
 0x149   :  { %v1296_v5 = vpop.f32.mrf.mxu0 }
 0x14a   :  { %v1297_v6 = vadd.f32 %v1296_v5, %v1257_v4 }
 0x14b   :  { %v1562_v7 = vpop.f32.mrf.mxu0 }
 0x14c   :  { %1302 = vst [vmem:[#allocation7] sm:$0xff] %v1297_v6 }
 0x14d   :  { %v1299_v8 = vpop.f32.mrf.mxu0 }
 0x14f   :  { %v1563_v9 = vpop.f32.mrf.mxu0 }
 0x150   :  { %1307 = vsyncadd [#allocation4], 96  ;;  %s1769_s2 = smov [#allocation7]  }
 0x151   :  { %s1308_s27 = sshll.u32 %s1769_s2, 4  ;;  %s1309_s27 = int_to_ptr.vmem [resolvable:$true] %s1308_s27 }
 0x152   :  { %s1734_s28 = scalar_lea.vmem %s1309_s27, 32  ;;  %s1738_s29 = scalar_lea.vmem %s1309_s27, 128 }
 0x153   :  { %p1735_p10 = scmp.ne.s32.totalorder %s1309_s27, %s1734_s28  ;;  %p1739_p11 = scmp.lt.s32.totalorder %s1309_s27, %s1309_s27 }
 0x154   :  { %p1740_p12 = scmp.lt.s32.totalorder %s1738_s29, %s1734_s28 }
 0x156   :  { %p1741_p13 = por %p1740_p12, %p1739_p11 }
 0x158   :  { %p1742_p0 = pnand %p1741_p13, %p1735_p10 }
 0x15a   :  { %1745 = shalt.err (!%p1742_p0)
}
 0x15b   :  { %s1770_s30 = smov 32   ;;  %s1771_s4 = smov 2  }
 0x15c   :  { %1314 = dma.vmem_to_hbm [thread:$0]  %s1309_s27, 32, %s1823_s3, [#allocation4], %s1770_s30, %s1770_s30, %s1771_s4  }
 0x15d   :  { %1758 = dma.done.wait [#allocation4], 128  }
 0x15e   :  { %1759 = vsyncadd [#allocation4], 4294967168 }
 0x15f   :  { %1318 = vsyncpa [#allocation3], 1 }
 0x160   :  { %1319 = vsyncpa [#allocation6], 1 }
 0x161   :  { %1320 = vsyncpa [#allocation4], 1 }

</bundles_post_ra>
